<compile_context>
chip_gen: v6e
topology: v6e:2x2x1
jax: 0.10.0
libtpu: 0.0.40
codegen_flags: <defaults>
</compile_context>

<pallas_src>
import functools

import jax
import jax.numpy as jnp
from jax import lax
from jax.experimental import pallas as pl
from jax.experimental.pallas import tpu as pltpu

_LANE = 128                      # channel dims padded to a multiple of this
_PADW = 8                        # sublane-aligned W halo inside the dw scratch
_VMEM_LIMIT = 32 * 1024 * 1024   # explicit scoped-VMEM budget (safe on v5e/v6e/v7x)


def _round_up(n, m):
    return ((n + m - 1) // m) * m


def _row_tile(m, target=256):
    """Largest multiple of 8 that divides m and is <= target (fallback: m)."""
    t = min(target, m)
    t -= t % 8
    while t >= 8 and m % t != 0:
        t -= 8
    return t if t >= 8 else m


# ----------------------------------------------------------------------------
# Pallas kernels
# ----------------------------------------------------------------------------
def _pw_kernel(x_ref, w_ref, s_ref, b_ref, o_ref, *, relu):
    """1x1 conv tile: (TM, K) @ (K, Cp) on the MXU + folded BN (+ ReLU)."""
    acc = jnp.dot(x_ref[...], w_ref[...], preferred_element_type=jnp.float32)
    acc = acc * s_ref[...] + b_ref[...]
    if relu:
        acc = jnp.maximum(acc, 0.0)
    o_ref[...] = acc.astype(o_ref.dtype)


def _pw_shortcut_kernel(y_ref, w3_ref, s3_ref, b3_ref,
                        x_ref, ws_ref, ss_ref, bs_ref, o_ref):
    """conv3 (1x1) + BN fused with the shortcut conv+BN (identity shortcut is
    a padded identity weight) -> one lane-dense store, no extra HBM round trip."""
    acc = jnp.dot(y_ref[...], w3_ref[...], preferred_element_type=jnp.float32)
    acc = acc * s3_ref[...] + b3_ref[...]
    sc = jnp.dot(x_ref[...], ws_ref[...], preferred_element_type=jnp.float32)
    acc = acc + sc * ss_ref[...] + bs_ref[...]
    o_ref[...] = acc.astype(o_ref.dtype)


def _dw_kernel(x_ref, w_ref, s_ref, b_ref, o_ref, xpad_ref, acc_ref, *, H, W):
    """Depthwise 3x3 (stride 1 over an implicitly zero-padded image) + folded
    BN + ReLU for one image.

    The 1-pixel halo is built inside VMEM (sublane-aligned interior copy into
    xpad_ref) instead of padding in HBM.  Each tap loads a leading-dim row
    slab from the scratch ref and accumulates into an f32 VMEM scratch.
    """
    xpad_ref[...] = jnp.zeros_like(xpad_ref)
    xpad_ref[pl.ds(1, H), pl.ds(_PADW, W), :] = x_ref[0].astype(jnp.float32)
    acc_ref[...] = jnp.zeros_like(acc_ref)
    for ky in range(3):
        row = xpad_ref[pl.ds(ky, H), :, :]              # (H, W + 2*_PADW, C)
        for kx in range(3):
            tap = row[:, _PADW - 1 + kx:_PADW - 1 + kx + W, :]
            acc_ref[...] += tap * w_ref[ky * 3 + kx, :]
    out = acc_ref[...] * s_ref[0] + b_ref[0]
    o_ref[0] = jnp.maximum(out, 0.0).astype(o_ref.dtype)


# ----------------------------------------------------------------------------
# Pallas wrappers
# ----------------------------------------------------------------------------
def pointwise_bn(x2d, w, scale, bias, *, relu, out_dtype, tile_rows=256):
    m, k = x2d.shape
    cout = w.shape[1]
    tm = _row_tile(m, tile_rows)
    s2 = scale.reshape(1, cout).astype(jnp.float32)
    b2 = bias.reshape(1, cout).astype(jnp.float32)
    return pl.pallas_call(
        functools.partial(_pw_kernel, relu=relu),
        out_shape=jax.ShapeDtypeStruct((m, cout), out_dtype),
        grid=(m // tm,),
        in_specs=[
            pl.BlockSpec((tm, k), lambda i: (i, 0)),
            pl.BlockSpec((k, cout), lambda i: (0, 0)),
            pl.BlockSpec((1, cout), lambda i: (0, 0)),
            pl.BlockSpec((1, cout), lambda i: (0, 0)),
        ],
        out_specs=pl.BlockSpec((tm, cout), lambda i: (i, 0)),
        compiler_params=pltpu.CompilerParams(
            dimension_semantics=("parallel",),
            vmem_limit_bytes=_VMEM_LIMIT),
    )(x2d, w, s2, b2)


def pointwise_bn_add_shortcut(y2d, w3, s3, b3, x2d, ws, ss, bs, *,
                              out_dtype, tile_rows=256):
    m, k1 = y2d.shape
    k2 = x2d.shape[1]
    cout = w3.shape[1]
    tm = _row_tile(m, tile_rows)
    s3r = s3.reshape(1, cout).astype(jnp.float32)
    b3r = b3.reshape(1, cout).astype(jnp.float32)
    ssr = ss.reshape(1, cout).astype(jnp.float32)
    bsr = bs.reshape(1, cout).astype(jnp.float32)
    return pl.pallas_call(
        _pw_shortcut_kernel,
        out_shape=jax.ShapeDtypeStruct((m, cout), out_dtype),
        grid=(m // tm,),
        in_specs=[
            pl.BlockSpec((tm, k1), lambda i: (i, 0)),
            pl.BlockSpec((k1, cout), lambda i: (0, 0)),
            pl.BlockSpec((1, cout), lambda i: (0, 0)),
            pl.BlockSpec((1, cout), lambda i: (0, 0)),
            pl.BlockSpec((tm, k2), lambda i: (i, 0)),
            pl.BlockSpec((k2, cout), lambda i: (0, 0)),
            pl.BlockSpec((1, cout), lambda i: (0, 0)),
            pl.BlockSpec((1, cout), lambda i: (0, 0)),
        ],
        out_specs=pl.BlockSpec((tm, cout), lambda i: (i, 0)),
        compiler_params=pltpu.CompilerParams(
            dimension_semantics=("parallel",),
            vmem_limit_bytes=_VMEM_LIMIT),
    )(y2d, w3, s3r, b3r, x2d, ws, ssr, bsr)


def depthwise_bn_relu(x, w9, scale, bias, *, out_dtype):
    n, h, w, c = x.shape
    s2 = scale.reshape(1, c).astype(jnp.float32)
    b2 = bias.reshape(1, c).astype(jnp.float32)
    # TODO(synk): for large images, tile over H rows (with a manual 2-row halo
    # DMA) instead of one whole image per grid step.
    return pl.pallas_call(
        functools.partial(_dw_kernel, H=h, W=w),
        out_shape=jax.ShapeDtypeStruct((n, h, w, c), out_dtype),
        grid=(n,),
        in_specs=[
            pl.BlockSpec((1, h, w, c), lambda i: (i, 0, 0, 0)),
            pl.BlockSpec((9, c), lambda i: (0, 0)),
            pl.BlockSpec((1, c), lambda i: (0, 0)),
            pl.BlockSpec((1, c), lambda i: (0, 0)),
        ],
        out_specs=pl.BlockSpec((1, h, w, c), lambda i: (i, 0, 0, 0)),
        scratch_shapes=[
            pltpu.VMEM((h + 2, w + 2 * _PADW, c), jnp.float32),   # padded image
            pltpu.VMEM((h, w, c), jnp.float32),                   # f32 accumulator
        ],
        compiler_params=pltpu.CompilerParams(
            dimension_semantics=("parallel",),
            vmem_limit_bytes=_VMEM_LIMIT),
    )(x, w9.astype(jnp.float32), s2, b2)


# ----------------------------------------------------------------------------
# Block forward
# ----------------------------------------------------------------------------
def block_forward_nhwc(x_nhwc, params, stride, *, compute_dtype=jnp.float32):
    n, h, w, cin = x_nhwc.shape
    pp = params["w1p"].shape[1]
    cop = params["w3p"].shape[1]
    cout = params["w3"].shape[1]

    x2d = x_nhwc.astype(compute_dtype).reshape(n * h * w, cin)

    # conv1 (1x1 expand) + bn1 + relu  -> lane-dense (M, Pp)
    y1 = pointwise_bn(x2d, params["w1p"].astype(compute_dtype),
                      params["s1p"], params["b1p"], relu=True,
                      out_dtype=compute_dtype)
    y1 = y1.reshape(n, h, w, pp)                         # contiguous: free

    # conv2 (depthwise 3x3, pad=1) + bn2 + relu; halo built inside VMEM
    y2 = depthwise_bn_relu(y1, params["w2p"], params["s2p"], params["b2p"],
                           out_dtype=compute_dtype)
    if stride > 1:
        # stride-s output == stride-1 output sampled every s pixels (k=3, pad=1)
        # TODO(synk): fold the stride into the depthwise kernel (strided taps /
        # strided out index_map) so the full-res map is never computed/stored.
        y2 = y2[:, ::stride, ::stride, :]
    ho, wo = y2.shape[1], y2.shape[2]
    y2d = y2.reshape(n * ho * wo, pp)                    # contiguous: free

    # conv3 (1x1 project) + bn3 (+ fused shortcut when stride == 1)
    if stride == 1:
        y3 = pointwise_bn_add_shortcut(
            y2d, params["w3p"].astype(compute_dtype),
            params["s3p"], params["b3p"],
            x2d, params["wsp"].astype(compute_dtype),
            params["ssp"], params["bsp"],
            out_dtype=compute_dtype)
    else:
        y3 = pointwise_bn(y2d, params["w3p"].astype(compute_dtype),
                          params["s3p"], params["b3p"], relu=False,
                          out_dtype=compute_dtype)

    return y3.reshape(n, ho, wo, cop)[..., :cout]


def block_forward(x_nchw, params, stride, *, compute_dtype=jnp.float32):
    xh = jnp.transpose(x_nchw, (0, 2, 3, 1))             # NCHW -> NHWC (once)
    y = block_forward_nhwc(xh, params, stride, compute_dtype=compute_dtype)
    return jnp.transpose(y, (0, 3, 1, 2)).astype(x_nchw.dtype)


# ----------------------------------------------------------------------------
# Deterministic parameter construction (eval-mode BN folded to scale/bias)
# ----------------------------------------------------------------------------
def _fold_bn(key, c, eps=1e-5):
    k1, k2, k3, k4 = jax.random.split(key, 4)
    gamma = 1.0 + 0.1 * jax.random.normal(k1, (c,), jnp.float32)
    beta = 0.1 * jax.random.normal(k2, (c,), jnp.float32)
    mean = 0.1 * jax.random.normal(k3, (c,), jnp.float32)
    var = jnp.abs(jax.random.normal(k4, (c,), jnp.float32)) + 0.5
    scale = gamma / jnp.sqrt(var + eps)
    bias = beta - mean * scale
    return scale, bias


def make_params(key, in_planes, out_planes, expansion, stride):
    planes = expansion * in_planes
    ks = jax.random.split(key, 8)
    p = {}
    # conv1: PyTorch (planes, in_planes, 1, 1) -> (in_planes, planes)
    p["w1"] = 0.2 * jax.random.normal(ks[0], (in_planes, planes), jnp.float32)
    p["s1"], p["b1"] = _fold_bn(ks[1], planes)
    # conv2 depthwise: PyTorch (planes, 1, 3, 3) -> (9, planes), row = ky*3+kx
    p["w2"] = 0.2 * jax.random.normal(ks[2], (9, planes), jnp.float32)
    p["s2"], p["b2"] = _fold_bn(ks[3], planes)
    # conv3: PyTorch (out_planes, planes, 1, 1) -> (planes, out_planes)
    p["w3"] = 0.2 * jax.random.normal(ks[4], (planes, out_planes), jnp.float32)
    p["s3"], p["b3"] = _fold_bn(ks[5], out_planes)
    if stride == 1 and in_planes != out_planes:
        p["ws"] = 0.2 * jax.random.normal(ks[6], (in_planes, out_planes),
                                          jnp.float32)
        p["ss"], p["bs"] = _fold_bn(ks[7], out_planes)

    # -- lane-dense (padded to multiples of 128) copies used by the Pallas path
    pp = _round_up(planes, _LANE)
    cop = _round_up(out_planes, _LANE)

    def pad_cols(w, cols):
        k, n_ = w.shape
        return jnp.zeros((k, cols), w.dtype).at[:, :n_].set(w)

    def pad_mat(w, rows, cols):
        k, n_ = w.shape
        return jnp.zeros((rows, cols), w.dtype).at[:k, :n_].set(w)

    def pad_vec(v, n_):
        return jnp.zeros((n_,), v.dtype).at[: v.shape[0]].set(v)

    p["w1p"] = pad_cols(p["w1"], pp)
    p["s1p"], p["b1p"] = pad_vec(p["s1"], pp), pad_vec(p["b1"], pp)
    p["w2p"] = pad_cols(p["w2"], pp)
    p["s2p"], p["b2p"] = pad_vec(p["s2"], pp), pad_vec(p["b2"], pp)
    p["w3p"] = pad_mat(p["w3"], pp, cop)
    p["s3p"], p["b3p"] = pad_vec(p["s3"], cop), pad_vec(p["b3"], cop)
    if stride == 1:
        if in_planes != out_planes:
            p["wsp"] = pad_cols(p["ws"], cop)
            p["ssp"], p["bsp"] = pad_vec(p["ss"], cop), pad_vec(p["bs"], cop)
        else:
            # identity shortcut expressed as a padded 1x1 identity conv so it
            # fuses into the conv3 kernel; exact in f32.
            p["wsp"] = pad_cols(jnp.eye(in_planes, dtype=jnp.float32), cop)
            p["ssp"] = pad_vec(jnp.ones((out_planes,), jnp.float32), cop)
            p["bsp"] = pad_vec(jnp.zeros((out_planes,), jnp.float32), cop)
    return p


# ----------------------------------------------------------------------------
# Pure-JAX reference (for correctness check)
# ----------------------------------------------------------------------------
def ref_block(x_nchw, params, stride):
    dn = ("NHWC", "HWIO", "NHWC")
    n, cin, h, w = x_nchw.shape
    planes = params["w1"].shape[1]
    cout = params["w3"].shape[1]
    xh = jnp.transpose(x_nchw, (0, 2, 3, 1))

    y = lax.conv_general_dilated(xh, params["w1"].reshape(1, 1, cin, planes),
                                 (1, 1), [(0, 0), (0, 0)], dimension_numbers=dn)
    y = jnp.maximum(y * params["s1"] + params["b1"], 0.0)

    w2 = params["w2"].reshape(3, 3, 1, planes)
    y = lax.conv_general_dilated(y, w2, (stride, stride), [(1, 1), (1, 1)],
                                 dimension_numbers=dn,
                                 feature_group_count=planes)
    y = jnp.maximum(y * params["s2"] + params["b2"], 0.0)

    y = lax.conv_general_dilated(y, params["w3"].reshape(1, 1, planes, cout),
                                 (1, 1), [(0, 0), (0, 0)], dimension_numbers=dn)
    y = y * params["s3"] + params["b3"]

    if stride == 1:
        if "ws" in params:
            sc = lax.conv_general_dilated(
                xh, params["ws"].reshape(1, 1, cin, cout), (1, 1),
                [(0, 0), (0, 0)], dimension_numbers=dn)
            sc = sc * params["ss"] + params["bs"]
        else:
            sc = xh
        y = y + sc
    return jnp.transpose(y, (0, 3, 1, 2))


# ----------------------------------------------------------------------------
if __name__ == "__main__":
    key = jax.random.PRNGKey(0)
    kx1, kx2, kp1, kp2, kp3 = jax.random.split(key, 5)

    # Case 1: stride=1, projection (conv+BN) shortcut, f32 path.
    x = jax.random.normal(kx1, (2, 4, 16, 16), jnp.float32)        # NCHW
    params = make_params(kp1, 4, 8, 2, 1)
    out = jax.block_until_ready(block_forward(x, params, 1))
    ref = jax.block_until_ready(ref_block(x, params, 1))
    assert out.shape == ref.shape == (2, 8, 16, 16)
    assert jnp.allclose(out, ref, rtol=1e-4, atol=1e-4), (
        float(jnp.max(jnp.abs(out - ref))))

    # Case 1b: same block with bf16 matmul/activation path (v6e/v7x win).
    out_bf = jax.block_until_ready(
        block_forward(x, params, 1, compute_dtype=jnp.bfloat16))
    assert jnp.allclose(out_bf, ref, rtol=5e-2, atol=1e-1), (
        float(jnp.max(jnp.abs(out_bf - ref))))

    # Case 2: stride=2 (no shortcut branch).
    params2 = make_params(kp2, 4, 8, 2, 2)
    out2 = jax.block_until_ready(block_forward(x, params2, 2))
    ref2 = jax.block_until_ready(ref_block(x, params2, 2))
    assert out2.shape == ref2.shape == (2, 8, 8, 8)
    assert jnp.allclose(out2, ref2, rtol=1e-4, atol=1e-4), (
        float(jnp.max(jnp.abs(out2 - ref2))))

    # Case 3: stride=1, identity shortcut (in_planes == out_planes).
    x3 = jax.random.normal(kx2, (2, 8, 16, 16), jnp.float32)
    params3 = make_params(kp3, 8, 8, 2, 1)
    out3 = jax.block_until_ready(block_forward(x3, params3, 1))
    ref3 = jax.block_until_ready(ref_block(x3, params3, 1))
    assert out3.shape == ref3.shape == (2, 8, 16, 16)
    assert jnp.allclose(out3, ref3, rtol=1e-4, atol=1e-4), (
        float(jnp.max(jnp.abs(out3 - ref3))))

    print("KERNEL_OK")
</pallas_src>

<mosaic_0001>
module attributes {stable_mosaic.version = 11 : i64} {
  func.func @_pw_kernel(%arg0: i32, %arg1: memref<256x4xf32, #tpu.memory_space<vmem>>, %arg2: memref<4x128xf32, #tpu.memory_space<vmem>>, %arg3: memref<1x128xf32, #tpu.memory_space<vmem>>, %arg4: memref<1x128xf32, #tpu.memory_space<vmem>>, %arg5: memref<256x128xf32, #tpu.memory_space<vmem>>) attributes {dimension_semantics = [#tpu.dimension_semantics<parallel>], iteration_bounds = array<i64: 2>, scalar_prefetch = 0 : i64, scratch_operands = 0 : i64, tpu.core_type = #tpu.core_type<tc>, window_params = [{transform_indices = @transform_0, window_bounds = array<i64: 256, 4>}, {pipeline_mode = #tpu.pipeline_mode<synchronous>, transform_indices = @transform_1, window_bounds = array<i64: 4, 128>}, {pipeline_mode = #tpu.pipeline_mode<synchronous>, transform_indices = @transform_2, window_bounds = array<i64: 1, 128>}, {pipeline_mode = #tpu.pipeline_mode<synchronous>, transform_indices = @transform_3, window_bounds = array<i64: 1, 128>}, {transform_indices = @transform_4, window_bounds = array<i64: 256, 128>}]} {
    %c0 = arith.constant 0 : index
    %c0_0 = arith.constant 0 : index
    %0 = vector.load %arg1[%c0, %c0_0] : memref<256x4xf32, #tpu.memory_space<vmem>>, vector<256x4xf32>
    %c0_1 = arith.constant 0 : index
    %c0_2 = arith.constant 0 : index
    %1 = vector.load %arg2[%c0_1, %c0_2] : memref<4x128xf32, #tpu.memory_space<vmem>>, vector<4x128xf32>
    %cst = arith.constant dense<0.000000e+00> : vector<256x128xf32>
    %2 = tpu.matmul %0, %1, %cst {dimension_numbers = #tpu.dot_dimension_numbers<[1], [0], [0], [1], [0, 0, 1, 1], [], []>} : vector<256x4xf32>, vector<4x128xf32>, vector<256x128xf32> -> vector<256x128xf32>
    %c0_3 = arith.constant 0 : index
    %c0_4 = arith.constant 0 : index
    %3 = vector.load %arg3[%c0_3, %c0_4] : memref<1x128xf32, #tpu.memory_space<vmem>>, vector<1x128xf32>
    %4 = vector.broadcast %3 : vector<1x128xf32> to vector<256x128xf32>
    %5 = arith.mulf %2, %4 : vector<256x128xf32>
    %c0_5 = arith.constant 0 : index
    %c0_6 = arith.constant 0 : index
    %6 = vector.load %arg4[%c0_5, %c0_6] : memref<1x128xf32, #tpu.memory_space<vmem>>, vector<1x128xf32>
    %7 = vector.broadcast %6 : vector<1x128xf32> to vector<256x128xf32>
    %8 = arith.addf %5, %7 : vector<256x128xf32>
    %cst_7 = arith.constant 0.000000e+00 : f32
    %9 = vector.broadcast %cst_7 : f32 to vector<256x128xf32>
    %10 = arith.maximumf %8, %9 : vector<256x128xf32>
    %c0_8 = arith.constant 0 : index
    %c0_9 = arith.constant 0 : index
    %11 = vector.load %arg5[%c0_8, %c0_9] : memref<256x128xf32, #tpu.memory_space<vmem>>, vector<256x128xf32>
    tpu.vector_store %arg5[%c0_8, %c0_9], %10 {strides = array<i32>} : memref<256x128xf32, #tpu.memory_space<vmem>>, vector<256x128xf32>,
    return
  }
  func.func @transform_0(%arg0: i32) -> (i32, i32) {
    %c0_i32 = arith.constant 0 : i32
    %c0_i32_0 = arith.constant 0 : i32
    return %arg0, %c0_i32 : i32, i32
  }
  func.func @transform_1(%arg0: i32) -> (i32, i32) {
    %c0_i32 = arith.constant 0 : i32
    %c0_i32_0 = arith.constant 0 : i32
    %c0_i32_1 = arith.constant 0 : i32
    return %c0_i32, %c0_i32_0 : i32, i32
  }
  func.func @transform_2(%arg0: i32) -> (i32, i32) {
    %c0_i32 = arith.constant 0 : i32
    %c0_i32_0 = arith.constant 0 : i32
    %c0_i32_1 = arith.constant 0 : i32
    return %c0_i32, %c0_i32_0 : i32, i32
  }
  func.func @transform_3(%arg0: i32) -> (i32, i32) {
    %c0_i32 = arith.constant 0 : i32
    %c0_i32_0 = arith.constant 0 : i32
    %c0_i32_1 = arith.constant 0 : i32
    return %c0_i32, %c0_i32_0 : i32, i32
  }
  func.func @transform_4(%arg0: i32) -> (i32, i32) {
    %c0_i32 = arith.constant 0 : i32
    %c0_i32_0 = arith.constant 0 : i32
    return %arg0, %c0_i32 : i32, i32
  }
}

</mosaic_0001>

<bundles_post_ra>
// kernel: tpu_custom_call.1
= control target key start
LH: loop header
LB: loop body
LE: loop exit
PB: predicated region body
PF: predicated region fallthrough
CT: control target
= control target key end

     0   :  { %9 = vsyncpa [#allocation3], 0  ;;  %s1323_s0 = inlined_call_operand.vmem [shape: f32[512,4], index: 0, kind: input, shape index: {}]   ;;  %s1324_s1 = inlined_call_operand.vmem [shape: f32[4,128], index: 1, kind: input, shape index: {}]   ;;  %s1325_s2 = inlined_call_operand.vmem [shape: f32[1,128], index: 2, kind: input, shape index: {}]   ;;  %s1326_s3 = inlined_call_operand.vmem [shape: f32[1,128], index: 3, kind: input, shape index: {}]   ;;  %s1327_s4 = inlined_call_operand.hbm [shape: f32[512,128], index: 4, kind: output, shape index: {}]  }
   0x1   :  { %11 = vsyncpa [#allocation3 + $0x1], 0  ;;  %s1040_s15 = smov 0   ;;  %s1042_s16 = smov 0  }
   0x2   :  { %s1044_s17 = smov 0   ;;  %s1046_s18 = smov 0  }
   0x3 LB: > { %s1061_s19 = sadd.s32 4294967295, %s1010_s18   ;;  %s776_s20 = sadd.s32 4294967294, %s1010_s18   ;;  %s1010_s18 = sphi %s1046_s18, %s1333_s18   ;;  %s1006_s17 = sphi %s1044_s17, %s1332_s17   ;;  %s1002_s16 = sphi %s1042_s16, %s1331_s16   ;;  %s998_s15 = sphi %s1040_s15, %s1330_s15  }
   0x4   : > { %s1065_s21 = sadd.s32 1, %s1010_s18   ;;  %s113_s22 = sadd.s32 1, %s1006_s17 }
   0x5   : > { %s110_s23 = ssub.s32 %s1010_s18, %s1065_s21  ;;  %p123_p0 = scmp.ne.s32.totalorder %s1006_s17, %s1002_s16 }
   0x6   : > { %p111_p1 = scmp.eq.s32.totalorder %s110_s23, 0  ;;  %p124_p2 = scmp.eq.s32.totalorder %s1061_s19, 1 }
   0x7   : > { %p129_p3 = scmp.ne.s32.totalorder %s1002_s16, %s998_s15  ;;  %p130_p4 = scmp.eq.s32.totalorder %s776_s20, 1 }
   0x8   : > { %s1076_s24 = scalar_select %p111_p1, %s1006_s17, %s113_s22  }
   0x9   : > { %p1078_p5 = por %p124_p2, %p123_p0  ;;  %p1082_p6 = por %p130_p4, %p129_p3 }
   0xa   : > { %p779_p7 = scmp.ge.s32.totalorder %s1010_s18, 1  ;;  %p166_p8 = scmp.lt.s32.totalorder %s1010_s18, 3 }
   0xc   : > { %p167_p9 = pnand %p779_p7, %p166_p8 }
   0xd   : > { %s781_s29 = sshll.u32 (!%p167_p9), %s1061_s19, 5  ;;  %s189_s8 = sand.u32 (!%p167_p9), 1, %s1002_s16  }
   0xe   : > { %170 = sbr.rel (%p167_p9) target bundleno = 268 (0x10c), region = 36  ;;  %p193_p10 = scmp.lt.s32.totalorder (!%p167_p9), %s781_s29, 63 }
   0xf   : > { %s780_s13 = sshll.u32 (!%p167_p9), %s189_s8, 8  ;;  %s823_s20 = sshll.u32 (!%p167_p9), %s1061_s19, 12 }
  0x10   : > { %s1184_s14 = scalar_lea.vmem (!%p167_p9), [#allocation2], %s780_s13  ;;  %s1273_s19 = scalar_lea.hbm (!%p167_p9), %s1327_s4, %s823_s20 }
  0x11   : > { %s714_s22 = sshll.u32 (!%p167_p9), %s1184_s14, 4  ;;  %s1283_s28 = scalar_lea.sflag (!%p167_p9), [#allocation3], %s189_s8  ;;  %s1275_s22 = int_to_ptr.vmem [resolvable:$true] %s714_s22 }
  0x13   : > { %v231_v0 = vld [vmem:[%s1324_s1] sm:$0xf]  ;;  %vm329_vm0 = vcmask 1043456   ;;  %s1335_s29 = smov (!%p193_p10, %s781_s29), 63  ;;  %vm232_vm1 = vcmask 31744  }
  0x14   : > { %857 = vmatprep.subr.msk.mxu0 %vm329_vm0, %v231_v0  ;;  %907 = vmatprep.subr.msk.mxu1 %vm329_vm0, %v231_v0  ;;  %s782_s30 = sshll.u32 %s1335_s29, 3  ;;  %v1165_v33 = vld [vmem:[%s1325_s2] ss:$0 sm:$0xff]  ;;  %s950_s29 = scalar_lea.vmem %s1275_s22, 4096 }
  0x15   : > { %858 = vmatpush3.msk.msra.mxu0 %vm329_vm0, %v231_v0  ;;  %908 = vmatpush3.msk.msra.mxu1 %vm329_vm0, %v231_v0  ;;  %s1095_s7 = scalar_lea.vmem %s1323_s0, %s782_s30  ;;  %v1170_v35 = vld [vmem:[%s1326_s3] ss:$0 sm:$0xff]  ;;  %p951_p11 = scmp.ne.s32.totalorder %s1275_s22, %s950_s29 }
  0x16   : > { %v199_v1 = vld [vmem:[%s1095_s7] sm:$0xff]  ;;  %v200_v3 = vld [vmem:[%s1095_s7 + $0x8] sm:$0xff]  ;;  %v201_v5 = vld [vmem:[%s1095_s7 + $0x10] sm:$0xff]  ;;  %s1012_s30 = smov [#allocation2]  }
  0x17   : > { %v215_v2 = vld [vmem:[%s1095_s7 + $0x80] sm:$0xff]  ;;  %859 = vmatprep.mubr.msk.f32.mxu0 %vm232_vm1, %v199_v1  ;;  %v216_v4 = vld [vmem:[%s1095_s7 + $0x88] sm:$0xff]  ;;  %v217_v6 = vld [vmem:[%s1095_s7 + $0x90] sm:$0xff]  ;;  %p952_p12 = pnand %p951_p11, %p1078_p5  ;;  %s954_s5 = sshll.u32 %s1012_s30, 4  ;;  %s955_s5 = int_to_ptr.vmem [resolvable:$false] %s954_s5 }
  0x18   : > { %883 = vmatprep.mubr.msk.f32.mxu1 %vm232_vm1, %v215_v2  ;;  %860 = vmatmul.mubr.msk.f32.vlgmr.msra.gmra.mxu0 %vm232_vm1, %v200_v3  ;;  %v202_v7 = vld [vmem:[%s1095_s7 + $0x18] sm:$0xff]  ;;  %v203_v9 = vld [vmem:[%s1095_s7 + $0x20] sm:$0xff]  ;;  %v204_v11 = vld [vmem:[%s1095_s7 + $0x28] sm:$0xff]  ;;  %s956_s6 = scalar_lea.vmem %s955_s5, 8192  ;;  %p957_p0 = scmp.lt.s32.totalorder %s1275_s22, %s955_s5 }
  0x19   : > { %884 = vmatmul.mubr.msk.f32.vlgmr.msra.gmra.mxu1 %vm232_vm1, %v216_v4  ;;  %862 = vmatprep.mubr.msk.f32.mxu0 %vm232_vm1, %v201_v5  ;;  %v218_v8 = vld [vmem:[%s1095_s7 + $0x98] sm:$0xff]  ;;  %v219_v10 = vld [vmem:[%s1095_s7 + $0xa0] sm:$0xff]  ;;  %v220_v12 = vld [vmem:[%s1095_s7 + $0xa8] sm:$0xff]  ;;  %p953_p13 = pneg %p952_p12  ;;  %p958_p1 = scmp.lt.s32.totalorder %s956_s6, %s950_s29 }
  0x1a   : > { %886 = vmatprep.mubr.msk.f32.mxu1 %vm232_vm1, %v217_v6  ;;  %v205_v13 = vld [vmem:[%s1095_s7 + $0x30] sm:$0xff]  ;;  %v206_v15 = vld [vmem:[%s1095_s7 + $0x38] sm:$0xff]  ;;  %v207_v17 = vld [vmem:[%s1095_s7 + $0x40] sm:$0xff] }
  0x1b   : > { %v221_v14 = vld [vmem:[%s1095_s7 + $0xb0] sm:$0xff]  ;;  %v222_v16 = vld [vmem:[%s1095_s7 + $0xb8] sm:$0xff]  ;;  %v223_v18 = vld [vmem:[%s1095_s7 + $0xc0] sm:$0xff]  ;;  %p959_p2 = por %p958_p1, %p957_p0 }
  0x1c   : > { %863 = vmatmul.mubr.msk.f32.gmra.mxu0 %vm232_vm1, %v202_v7  ;;  %v208_v19 = vld [vmem:[%s1095_s7 + $0x48] sm:$0xff]  ;;  %v209_v21 = vld [vmem:[%s1095_s7 + $0x50] sm:$0xff]  ;;  %v210_v23 = vld [vmem:[%s1095_s7 + $0x58] sm:$0xff] }
  0x1d   : > { %887 = vmatmul.mubr.msk.f32.gmra.mxu1 %vm232_vm1, %v218_v8  ;;  %865 = vmatprep.mubr.msk.f32.mxu0 %vm232_vm1, %v203_v9  ;;  %v224_v20 = vld [vmem:[%s1095_s7 + $0xc8] sm:$0xff]  ;;  %v225_v22 = vld [vmem:[%s1095_s7 + $0xd0] sm:$0xff]  ;;  %v226_v24 = vld [vmem:[%s1095_s7 + $0xd8] sm:$0xff]  ;;  %p960_p3 = pnand %p959_p2, %p953_p13 }
  0x1e   : > { %889 = vmatprep.mubr.msk.f32.mxu1 %vm232_vm1, %v219_v10  ;;  %v211_v25 = vld [vmem:[%s1095_s7 + $0x60] sm:$0xff]  ;;  %v212_v27 = vld [vmem:[%s1095_s7 + $0x68] sm:$0xff]  ;;  %v213_v29 = vld [vmem:[%s1095_s7 + $0x70] sm:$0xff] }
  0x1f   : > { %v227_v26 = vld [vmem:[%s1095_s7 + $0xe0] sm:$0xff]  ;;  %v228_v28 = vld [vmem:[%s1095_s7 + $0xe8] sm:$0xff]  ;;  %v229_v30 = vld [vmem:[%s1095_s7 + $0xf0] sm:$0xff] }
  0x20   : > { %866 = vmatmul.mubr.msk.f32.gmra.mxu0 %vm232_vm1, %v204_v11  ;;  %v214_v31 = vld [vmem:[%s1095_s7 + $0x78] sm:$0xff] }
  0x21   : > { %890 = vmatmul.mubr.msk.f32.gmra.mxu1 %vm232_vm1, %v220_v12  ;;  %868 = vmatprep.mubr.msk.f32.mxu0 %vm232_vm1, %v205_v13  ;;  %v230_v32 = vld [vmem:[%s1095_s7 + $0xf8] sm:$0xff] }
  0x22   : > { %892 = vmatprep.mubr.msk.f32.mxu1 %vm232_vm1, %v221_v14 }
  0x24   : > { %869 = vmatmul.mubr.msk.f32.gmra.mxu0 %vm232_vm1, %v206_v15 }
  0x25   : > { %893 = vmatmul.mubr.msk.f32.gmra.mxu1 %vm232_vm1, %v222_v16  ;;  %871 = vmatprep.mubr.msk.f32.mxu0 %vm232_vm1, %v207_v17 }
  0x26   : > { %895 = vmatprep.mubr.msk.f32.mxu1 %vm232_vm1, %v223_v18 }
  0x28   : > { %872 = vmatmul.mubr.msk.f32.gmra.mxu0 %vm232_vm1, %v208_v19 }
  0x29   : > { %896 = vmatmul.mubr.msk.f32.gmra.mxu1 %vm232_vm1, %v224_v20  ;;  %874 = vmatprep.mubr.msk.f32.mxu0 %vm232_vm1, %v209_v21 }
  0x2a   : > { %898 = vmatprep.mubr.msk.f32.mxu1 %vm232_vm1, %v225_v22 }
  0x2c   : > { %875 = vmatmul.mubr.msk.f32.gmra.mxu0 %vm232_vm1, %v210_v23 }
  0x2d   : > { %899 = vmatmul.mubr.msk.f32.gmra.mxu1 %vm232_vm1, %v226_v24  ;;  %877 = vmatprep.mubr.msk.f32.mxu0 %vm232_vm1, %v211_v25 }
  0x2e   : > { %901 = vmatprep.mubr.msk.f32.mxu1 %vm232_vm1, %v227_v26 }
  0x30   : > { %878 = vmatmul.mubr.msk.f32.gmra.mxu0 %vm232_vm1, %v212_v27 }
  0x31   : > { %902 = vmatmul.mubr.msk.f32.gmra.mxu1 %vm232_vm1, %v228_v28  ;;  %880 = vmatprep.mubr.msk.f32.mxu0 %vm232_vm1, %v213_v29 }
  0x32   : > { %904 = vmatprep.mubr.msk.f32.mxu1 %vm232_vm1, %v229_v30 }
  0x34   : > { %881 = vmatmul.mubr.msk.f32.gmra.mxu0 %vm232_vm1, %v214_v31 }
  0x35   : > { %905 = vmatmul.mubr.msk.f32.gmra.mxu1 %vm232_vm1, %v230_v32 }
  0xd8   : > { %v861_v34 = vpop.f32.mrf.mxu0 }
  0xd9   : > { %v885_v36 = vpop.f32.mrf.mxu1  ;;  %v566_v37 = vmul.f32 %v861_v34, %v1165_v33 }
  0xda   : > { %v582_v38 = vmul.f32 %v885_v36, %v1165_v33  ;;  %v399_v39 = vpop.f32.mrf.mxu0 }
  0xdb   : > { %v479_v40 = vpop.f32.mrf.mxu1  ;;  %v605_v41 = vadd.f32 %v1170_v35, %v566_v37  ;;  %v565_v43 = vmul.f32 %v1165_v33, %v399_v39 }
  0xdc   : > { %v621_v42 = vadd.f32 %v1170_v35, %v582_v38  ;;  %v581_v44 = vmul.f32 %v1165_v33, %v479_v40  ;;  %v864_v45 = vpop.f32.mrf.mxu0 }
  0xdd   : > { %v888_v46 = vpop.f32.mrf.mxu1  ;;  %v637_v47 = vmax.f32 %v605_v41, 0.0  ;;  %v604_v49 = vadd.f32 %v1170_v35, %v565_v43  ;;  %v568_v51 = vmul.f32 %v864_v45, %v1165_v33 }
  0xde   : > { %v653_v48 = vmax.f32 %v621_v42, 0.0  ;;  %v620_v50 = vadd.f32 %v1170_v35, %v581_v44  ;;  %v584_v52 = vmul.f32 %v888_v46, %v1165_v33  ;;  %v409_v53 = vpop.f32.mrf.mxu0 }
  0xdf   : > { %v489_v54 = vpop.f32.mrf.mxu1  ;;  %669 = vst [vmem:[%s1184_s14 + $0x8] sm:$0xff] %v637_v47  ;;  %v636_v55 = vmax.f32 %v604_v49, 0.0  ;;  %v567_v57 = vmul.f32 %v1165_v33, %v409_v53  ;;  %v607_v59 = vadd.f32 %v1170_v35, %v568_v51 }
  0xe0   : > { %685 = vst [vmem:[%s1184_s14 + $0x88] sm:$0xff] %v653_v48  ;;  %v652_v56 = vmax.f32 %v620_v50, 0.0  ;;  %v583_v58 = vmul.f32 %v1165_v33, %v489_v54  ;;  %v623_v60 = vadd.f32 %v1170_v35, %v584_v52  ;;  %v867_v61 = vpop.f32.mrf.mxu0 }
  0xe1   : > { %v891_v62 = vpop.f32.mrf.mxu1  ;;  %668 = vst [vmem:[%s1184_s14] sm:$0xff] %v636_v55  ;;  %v606_v63 = vadd.f32 %v1170_v35, %v567_v57  ;;  %v570_v1 = vmul.f32 %v867_v61, %v1165_v33  ;;  %v639_v3 = vmax.f32 %v607_v59, 0.0 }
  0xe2   : > { %684 = vst [vmem:[%s1184_s14 + $0x80] sm:$0xff] %v652_v56  ;;  %v622_v0 = vadd.f32 %v1170_v35, %v583_v58  ;;  %v586_v2 = vmul.f32 %v891_v62, %v1165_v33  ;;  %v655_v4 = vmax.f32 %v623_v60, 0.0  ;;  %v419_v5 = vpop.f32.mrf.mxu0 }
  0xe3   : > { %v499_v6 = vpop.f32.mrf.mxu1  ;;  %v638_v7 = vmax.f32 %v606_v63, 0.0  ;;  %v609_v9 = vadd.f32 %v1170_v35, %v570_v1  ;;  %671 = vst [vmem:[%s1184_s14 + $0x18] sm:$0xff] %v639_v3  ;;  %v569_v11 = vmul.f32 %v1165_v33, %v419_v5 }
  0xe4   : > { %v654_v8 = vmax.f32 %v622_v0, 0.0  ;;  %v625_v10 = vadd.f32 %v1170_v35, %v586_v2  ;;  %687 = vst [vmem:[%s1184_s14 + $0x98] sm:$0xff] %v655_v4  ;;  %v585_v12 = vmul.f32 %v1165_v33, %v499_v6  ;;  %v870_v13 = vpop.f32.mrf.mxu0 }
  0xe5   : > { %v894_v14 = vpop.f32.mrf.mxu1  ;;  %670 = vst [vmem:[%s1184_s14 + $0x10] sm:$0xff] %v638_v7  ;;  %v641_v15 = vmax.f32 %v609_v9, 0.0  ;;  %v572_v17 = vmul.f32 %v870_v13, %v1165_v33  ;;  %v608_v19 = vadd.f32 %v1170_v35, %v569_v11 }
  0xe6   : > { %686 = vst [vmem:[%s1184_s14 + $0x90] sm:$0xff] %v654_v8  ;;  %v657_v16 = vmax.f32 %v625_v10, 0.0  ;;  %v588_v18 = vmul.f32 %v894_v14, %v1165_v33  ;;  %v624_v20 = vadd.f32 %v1170_v35, %v585_v12  ;;  %v429_v21 = vpop.f32.mrf.mxu0 }
  0xe7   : > { %v509_v22 = vpop.f32.mrf.mxu1  ;;  %673 = vst [vmem:[%s1184_s14 + $0x28] sm:$0xff] %v641_v15  ;;  %v611_v23 = vadd.f32 %v1170_v35, %v572_v17  ;;  %v571_v25 = vmul.f32 %v1165_v33, %v429_v21  ;;  %v640_v27 = vmax.f32 %v608_v19, 0.0 }
  0xe8   : > { %689 = vst [vmem:[%s1184_s14 + $0xa8] sm:$0xff] %v657_v16  ;;  %v627_v24 = vadd.f32 %v1170_v35, %v588_v18  ;;  %v587_v26 = vmul.f32 %v1165_v33, %v509_v22  ;;  %v656_v28 = vmax.f32 %v624_v20, 0.0  ;;  %v873_v29 = vpop.f32.mrf.mxu0 }
  0xe9   : > { %v897_v30 = vpop.f32.mrf.mxu1  ;;  %v643_v31 = vmax.f32 %v611_v23, 0.0  ;;  %v610_v34 = vadd.f32 %v1170_v35, %v571_v25  ;;  %672 = vst [vmem:[%s1184_s14 + $0x20] sm:$0xff] %v640_v27  ;;  %v574_v37 = vmul.f32 %v873_v29, %v1165_v33 }
  0xea   : > { %v659_v32 = vmax.f32 %v627_v24, 0.0  ;;  %v626_v36 = vadd.f32 %v1170_v35, %v587_v26  ;;  %688 = vst [vmem:[%s1184_s14 + $0xa0] sm:$0xff] %v656_v28  ;;  %v590_v38 = vmul.f32 %v897_v30, %v1165_v33  ;;  %v439_v39 = vpop.f32.mrf.mxu0 }
  0xeb   : > { %v519_v40 = vpop.f32.mrf.mxu1  ;;  %675 = vst [vmem:[%s1184_s14 + $0x38] sm:$0xff] %v643_v31  ;;  %v642_v41 = vmax.f32 %v610_v34, 0.0  ;;  %v573_v43 = vmul.f32 %v1165_v33, %v439_v39  ;;  %v613_v45 = vadd.f32 %v1170_v35, %v574_v37 }
  0xec   : > { %691 = vst [vmem:[%s1184_s14 + $0xb8] sm:$0xff] %v659_v32  ;;  %v658_v42 = vmax.f32 %v626_v36, 0.0  ;;  %v589_v44 = vmul.f32 %v1165_v33, %v519_v40  ;;  %v629_v46 = vadd.f32 %v1170_v35, %v590_v38  ;;  %v876_v47 = vpop.f32.mrf.mxu0 }
  0xed   : > { %v900_v48 = vpop.f32.mrf.mxu1  ;;  %674 = vst [vmem:[%s1184_s14 + $0x30] sm:$0xff] %v642_v41  ;;  %v612_v49 = vadd.f32 %v1170_v35, %v573_v43  ;;  %v576_v51 = vmul.f32 %v876_v47, %v1165_v33  ;;  %v645_v53 = vmax.f32 %v613_v45, 0.0 }
  0xee   : > { %690 = vst [vmem:[%s1184_s14 + $0xb0] sm:$0xff] %v658_v42  ;;  %v628_v50 = vadd.f32 %v1170_v35, %v589_v44  ;;  %v592_v52 = vmul.f32 %v900_v48, %v1165_v33  ;;  %v661_v54 = vmax.f32 %v629_v46, 0.0  ;;  %v449_v55 = vpop.f32.mrf.mxu0 }
  0xef   : > { %v529_v56 = vpop.f32.mrf.mxu1  ;;  %v644_v57 = vmax.f32 %v612_v49, 0.0  ;;  %v615_v59 = vadd.f32 %v1170_v35, %v576_v51  ;;  %677 = vst [vmem:[%s1184_s14 + $0x48] sm:$0xff] %v645_v53  ;;  %v575_v61 = vmul.f32 %v1165_v33, %v449_v55 }
  0xf0   : > { %v660_v58 = vmax.f32 %v628_v50, 0.0  ;;  %v631_v60 = vadd.f32 %v1170_v35, %v592_v52  ;;  %693 = vst [vmem:[%s1184_s14 + $0xc8] sm:$0xff] %v661_v54  ;;  %v591_v62 = vmul.f32 %v1165_v33, %v529_v56  ;;  %v879_v63 = vpop.f32.mrf.mxu0 }
  0xf1   : > { %v903_v0 = vpop.f32.mrf.mxu1  ;;  %676 = vst [vmem:[%s1184_s14 + $0x40] sm:$0xff] %v644_v57  ;;  %v647_v1 = vmax.f32 %v615_v59, 0.0  ;;  %v578_v3 = vmul.f32 %v879_v63, %v1165_v33  ;;  %v614_v5 = vadd.f32 %v1170_v35, %v575_v61 }
  0xf2   : > { %692 = vst [vmem:[%s1184_s14 + $0xc0] sm:$0xff] %v660_v58  ;;  %v663_v2 = vmax.f32 %v631_v60, 0.0  ;;  %v594_v4 = vmul.f32 %v903_v0, %v1165_v33  ;;  %v630_v6 = vadd.f32 %v1170_v35, %v591_v62  ;;  %v459_v7 = vpop.f32.mrf.mxu0 }
  0xf3   : > { %v539_v8 = vpop.f32.mrf.mxu1  ;;  %679 = vst [vmem:[%s1184_s14 + $0x58] sm:$0xff] %v647_v1  ;;  %v617_v9 = vadd.f32 %v1170_v35, %v578_v3  ;;  %v577_v11 = vmul.f32 %v1165_v33, %v459_v7  ;;  %v646_v13 = vmax.f32 %v614_v5, 0.0 }
  0xf4   : > { %695 = vst [vmem:[%s1184_s14 + $0xd8] sm:$0xff] %v663_v2  ;;  %v633_v10 = vadd.f32 %v1170_v35, %v594_v4  ;;  %v593_v12 = vmul.f32 %v1165_v33, %v539_v8  ;;  %v662_v14 = vmax.f32 %v630_v6, 0.0  ;;  %v882_v15 = vpop.f32.mrf.mxu0 }
  0xf5   : > { %v906_v16 = vpop.f32.mrf.mxu1  ;;  %v649_v17 = vmax.f32 %v617_v9, 0.0  ;;  %v616_v19 = vadd.f32 %v1170_v35, %v577_v11  ;;  %678 = vst [vmem:[%s1184_s14 + $0x50] sm:$0xff] %v646_v13  ;;  %v580_v21 = vmul.f32 %v882_v15, %v1165_v33 }
  0xf6   : > { %v665_v18 = vmax.f32 %v633_v10, 0.0  ;;  %v632_v20 = vadd.f32 %v1170_v35, %v593_v12  ;;  %694 = vst [vmem:[%s1184_s14 + $0xd0] sm:$0xff] %v662_v14  ;;  %v596_v22 = vmul.f32 %v906_v16, %v1165_v33  ;;  %v469_v23 = vpop.f32.mrf.mxu0 }
  0xf7   : > { %v549_v24 = vpop.f32.mrf.mxu1  ;;  %681 = vst [vmem:[%s1184_s14 + $0x68] sm:$0xff] %v649_v17  ;;  %v648_v25 = vmax.f32 %v616_v19, 0.0  ;;  %v579_v27 = vmul.f32 %v1165_v33, %v469_v23  ;;  %v619_v29 = vadd.f32 %v1170_v35, %v580_v21 }
  0xf8   : > { %697 = vst [vmem:[%s1184_s14 + $0xe8] sm:$0xff] %v665_v18  ;;  %v664_v26 = vmax.f32 %v632_v20, 0.0  ;;  %v595_v28 = vmul.f32 %v1165_v33, %v549_v24  ;;  %v635_v30 = vadd.f32 %v1170_v35, %v596_v22 }
  0xf9   : > { %680 = vst [vmem:[%s1184_s14 + $0x60] sm:$0xff] %v648_v25  ;;  %v618_v31 = vadd.f32 %v1170_v35, %v579_v27  ;;  %v651_v34 = vmax.f32 %v619_v29, 0.0 }
  0xfa   : > { %696 = vst [vmem:[%s1184_s14 + $0xe0] sm:$0xff] %v664_v26  ;;  %v634_v32 = vadd.f32 %v1170_v35, %v595_v28  ;;  %v667_v36 = vmax.f32 %v635_v30, 0.0 }
  0xfb   : > { %v650_v33 = vmax.f32 %v618_v31, 0.0  ;;  %683 = vst [vmem:[%s1184_s14 + $0x78] sm:$0xff] %v651_v34 }
  0xfc   : > { %v666_v37 = vmax.f32 %v634_v32, 0.0  ;;  %699 = vst [vmem:[%s1184_s14 + $0xf8] sm:$0xff] %v667_v36 }
  0xfd   : > { %682 = vst [vmem:[%s1184_s14 + $0x70] sm:$0xff] %v650_v33 }
  0xfe   : > { %698 = vst [vmem:[%s1184_s14 + $0xf0] sm:$0xff] %v666_v37 }
  0xff   : > { %963 = shalt.err (!%p960_p3)
}
 0x100   : > { %s964_s7 = scalar_lea.hbm %s1273_s19, 4096  ;;  %s968_s10 = scalar_lea.hbm %s1327_s4, 8192 }
 0x101   : > { %p965_p4 = scmp.ne.s32.totalorder %s1273_s19, %s964_s7  ;;  %p969_p9 = scmp.lt.s32.totalorder %s1273_s19, %s1327_s4 }
 0x102   : > { %p970_p10 = scmp.lt.s32.totalorder %s968_s10, %s964_s7 }
 0x103   : > { %p966_p7 = pnand %p965_p4, %p1078_p5 }
 0x104   : > { %p971_p11 = por %p970_p10, %p969_p9 }
 0x105   : > { %p967_p8 = pneg %p966_p7 }
 0x107   : > { %p972_p12 = pnand %p971_p11, %p967_p8 }
 0x109   : > { %975 = shalt.err (!%p972_p12)
}
 0x10a   : > { %s1013_s13 = smov 128   ;;  %s1014_s14 = smov 8  }
 0x10b   : > { %909 = dma.vmem_to_hbm [thread:$0]  (%p1078_p5), %s1275_s22, 4096, %s1273_s19, %s1283_s28, %s1013_s13, %s1013_s13, %s1014_s14  }
 0x10c PF: > { %p915_p13 = scmp.ge.s32.totalorder %s1010_s18, 2  ;;  %s729_s20 = sand.u32 1, %s998_s15  }
 0x10d   : > { %s730_s23 = scalar_lea.sflag [#allocation3], %s729_s20 }
 0x10e   : > { %p912_p0 = pnand %p915_p13, %p1082_p6 }
 0x110   : > { %p913_p1 = pneg %p912_p0 }
 0x112   : > { %993 = dma.done.wait (%p913_p1), %s730_s23, 4096  }
 0x113   : > { %995 = vsyncadd (%p913_p1), %s730_s23, 4294963200  ;;  %p14_p2 = scmp.ge.s32.totalorder %s1065_s21, 4   ;;  %s1330_s15 = smov %s1002_s16 }
 0x114   : > { %s1331_s16 = smov %s1006_s17  ;;  %s1332_s17 = smov %s1076_s24 }
 0x115   : > { %s1333_s18 = smov %s1065_s21  ;;  %16 = sbr.rel (!%p14_p2) target bundleno = 3 (0x3), region = 71 }
 0x11a   :  { %735 = vsyncpa [#allocation3], 1 }
 0x11b   :  { %737 = vsyncpa [#allocation3 + $0x1], 1 }

</bundles_post_ra>
